<compile_context>
chip_gen: v5e
topology: v5e:2x2
jax: 0.10.0
libtpu: 0.0.40
codegen_flags: <defaults>
</compile_context>

<pallas_src>
import functools
import math

import jax
import jax.numpy as jnp
from jax.experimental import pallas as pl
from jax.experimental.pallas import tpu as pltpu


# ----------------------------- helpers --------------------------------------

def _round_up(x, m):
    return (x + m - 1) // m * m


def _pad_to(a, shape):
    pads = [(0, t - s) for s, t in zip(a.shape, shape)]
    return jnp.pad(a, pads)


# ----------------------------- kernels --------------------------------------

def xh_kernel(x_ref, h_ref, xh_ref):
    # xh = x @ H  (bf16 operands, f32 accumulation, stored back as bf16)
    xh_ref[...] = jnp.dot(x_ref[...], h_ref[...],
                          preferred_element_type=jnp.float32).astype(xh_ref.dtype)


def rel_embed_kernel(xq_ref, xkv_ref, xh_ref, inds_col_ref, inds_row_ref,
                     w_ref, fc0_wT_ref, fc0_b_ref, fc1_wT_ref, fc1_b_ref,
                     out1_ref, out2_ref):
    f32 = jnp.float32
    bf16 = jnp.bfloat16

    x_q = xq_ref[...]                                             # (T, Dp) bf16

    # logits = (x_q @ W) @ x_full^T   -- NT contraction, no transpose of x.
    xw = jnp.dot(x_q, w_ref[...], preferred_element_type=f32)     # (T, Dp) f32
    logits = jax.lax.dot_general(
        xw.astype(bf16), xkv_ref[...],
        dimension_numbers=(((1,), (1,)), ((), ())),
        preferred_element_type=f32)                               # (T, Np) f32

    # Elementwise path in f32: sigmoid, exp, same-image mask, row-normalize.
    rel1_ = jax.nn.sigmoid(logits)
    rel1_exp = jnp.exp(rel1_)
    mask = (inds_col_ref[...] == inds_row_ref[...]).astype(f32)   # (T, Np)
    rel1_exp = rel1_exp * mask
    denom = jnp.sum(rel1_exp, axis=-1, keepdims=True) + 1e-8
    rel1 = rel1_exp * pl.reciprocal(denom, approx=True)           # (T, Np) f32

    # output1 = x + fc0( rel1 @ (x @ H) )
    agg = jnp.dot(rel1.astype(bf16), xh_ref[...],
                  preferred_element_type=f32)                     # (T, dhp)
    fc0_out = jnp.dot(agg.astype(bf16), fc0_wT_ref[...],
                      preferred_element_type=f32) + fc0_b_ref[...]
    out1 = x_q.astype(f32) + fc0_out
    out1_ref[...] = out1.astype(out1_ref.dtype)

    # output2 = fc1(output1)
    out2 = jnp.dot(out1.astype(bf16), fc1_wT_ref[...],
                   preferred_element_type=f32) + fc1_b_ref[...]
    out2_ref[...] = out2.astype(out2_ref.dtype)


# ----------------------------- wrapper --------------------------------------

@functools.partial(jax.jit, static_argnames=("tile_n",))
def relational_embedding(x, im_inds, params, *, tile_n=128):
    """x: (N, D) f32, im_inds: (N,) int. Returns (output1 (N,D), output2 (N,Dout))."""
    N, D = x.shape
    d_h = params["H"].shape[1]
    Dout = params["fc1_wT"].shape[1]

    # Tile / pad geometry.  Row tile >= 8, feature dims padded to 128 lanes.
    tile = _round_up(min(max(tile_n, 8), _round_up(N, 8)), 8)
    N_pad = _round_up(N, tile)
    D_pad = _round_up(D, 128)
    dh_pad = _round_up(d_h, 128)
    Dout_pad = _round_up(Dout, 128)
    grid = (N_pad // tile,)

    bf16 = jnp.bfloat16
    x_bf = _pad_to(x, (N_pad, D_pad)).astype(bf16)
    W_bf = _pad_to(params["W"], (D_pad, D_pad)).astype(bf16)
    H_bf = _pad_to(params["H"], (D_pad, dh_pad)).astype(bf16)
    fc0_wT_bf = _pad_to(params["fc0_wT"], (dh_pad, D_pad)).astype(bf16)
    fc1_wT_bf = _pad_to(params["fc1_wT"], (D_pad, Dout_pad)).astype(bf16)
    fc0_b = _pad_to(params["fc0_b"], (1, D_pad)).astype(jnp.float32)
    fc1_b = _pad_to(params["fc1_b"], (1, Dout_pad)).astype(jnp.float32)

    # Padded rows get a -1 sentinel so they never match a real image index.
    inds = jnp.full((N_pad,), -1, jnp.int32).at[:N].set(im_inds.astype(jnp.int32))
    inds_col = inds.reshape(N_pad, 1)     # row-tiled (tile, 1) column view
    inds_row = inds.reshape(1, N_pad)     # lane-dense full row, grid-invariant

    # ---- pass 1: xh = x @ H (computed once, row-tiled, bf16 result) --------
    xh_bf = pl.pallas_call(
        xh_kernel,
        out_shape=jax.ShapeDtypeStruct((N_pad, dh_pad), bf16),
        grid=grid,
        in_specs=[pl.BlockSpec((tile, D_pad), lambda i: (i, 0)),
                  pl.BlockSpec((D_pad, dh_pad), lambda i: (0, 0))],
        out_specs=pl.BlockSpec((tile, dh_pad), lambda i: (i, 0)),
        compiler_params=pltpu.CompilerParams(
            dimension_semantics=("parallel",)),
    )(x_bf, H_bf)

    # ---- pass 2: relation + aggregation + fc0/fc1, row-tiled ----------------
    flops = 2 * (N_pad * D_pad * D_pad          # x @ W
                 + N_pad * N_pad * D_pad        # logits (NT)
                 + N_pad * N_pad * dh_pad       # rel1 @ xh
                 + N_pad * dh_pad * D_pad       # fc0
                 + N_pad * D_pad * Dout_pad)    # fc1
    bytes_accessed = (2 * x_bf.size * 2 + xh_bf.size * 2
                      + W_bf.size * 2 + fc0_wT_bf.size * 2 + fc1_wT_bf.size * 2
                      + (fc0_b.size + fc1_b.size) * 4
                      + 2 * N_pad * 4
                      + N_pad * D_pad * 4 + N_pad * Dout_pad * 4)
    cost = pl.CostEstimate(flops=int(flops),
                           transcendentals=int(2 * N_pad * N_pad),
                           bytes_accessed=int(bytes_accessed))

    # Explicit VMEM budget (resident weights + x + xh, per-step tiles,
    # a few live (tile, N_pad) f32 relation slabs), with headroom.
    resident = (x_bf.size + xh_bf.size + W_bf.size
                + fc0_wT_bf.size + fc1_wT_bf.size) * 2 + (D_pad + Dout_pad) * 4
    per_step = (tile * D_pad * 2 + (tile + N_pad) * 4
                + tile * D_pad * 4 + tile * Dout_pad * 4)
    temps = 6 * tile * N_pad * 4
    vmem_est = 2 * resident + 2 * per_step + temps
    vmem_limit = int(min(max(vmem_est * 3 // 2, 16 * 1024 * 1024),
                         40 * 1024 * 1024))

    out1_p, out2_p = pl.pallas_call(
        rel_embed_kernel,
        out_shape=(jax.ShapeDtypeStruct((N_pad, D_pad), jnp.float32),
                   jax.ShapeDtypeStruct((N_pad, Dout_pad), jnp.float32)),
        grid=grid,
        in_specs=[
            pl.BlockSpec((tile, D_pad), lambda i: (i, 0)),       # x (query rows)
            pl.BlockSpec((N_pad, D_pad), lambda i: (0, 0)),      # x (full, resident)
            pl.BlockSpec((N_pad, dh_pad), lambda i: (0, 0)),     # x @ H (resident)
            pl.BlockSpec((tile, 1), lambda i: (i, 0)),           # im_inds (row tile)
            pl.BlockSpec((1, N_pad), lambda i: (0, 0)),          # im_inds (full row)
            pl.BlockSpec((D_pad, D_pad), lambda i: (0, 0)),      # W
            pl.BlockSpec((dh_pad, D_pad), lambda i: (0, 0)),     # fc0 weight^T
            pl.BlockSpec((1, D_pad), lambda i: (0, 0)),          # fc0 bias
            pl.BlockSpec((D_pad, Dout_pad), lambda i: (0, 0)),   # fc1 weight^T
            pl.BlockSpec((1, Dout_pad), lambda i: (0, 0)),       # fc1 bias
        ],
        out_specs=(pl.BlockSpec((tile, D_pad), lambda i: (i, 0)),
                   pl.BlockSpec((tile, Dout_pad), lambda i: (i, 0))),
        compiler_params=pltpu.CompilerParams(
            dimension_semantics=("parallel",),
            vmem_limit_bytes=vmem_limit),
        cost_estimate=cost,
    )(x_bf, x_bf, xh_bf, inds_col, inds_row,
      W_bf, fc0_wT_bf, fc0_b, fc1_wT_bf, fc1_b)

    return out1_p[:N, :D], out2_p[:N, :Dout]


# ----------------------------- params & references --------------------------

def init_params(key, input_dim, output_dim, hr=2):
    """Mirrors Relational_Embeding.reset_parameters (uniform(-stdv, stdv))."""
    d_h = input_dim // hr
    ks = jax.random.split(key, 6)

    stdv_w = 1.0 / math.sqrt(input_dim)
    W = jax.random.uniform(ks[0], (input_dim, input_dim), jnp.float32, -stdv_w, stdv_w)

    stdv_h = 1.0 / math.sqrt(d_h)
    H = jax.random.uniform(ks[1], (input_dim, d_h), jnp.float32, -stdv_h, stdv_h)

    stdv_fc0 = 1.0 / math.sqrt(d_h)
    fc0_w = jax.random.uniform(ks[2], (input_dim, d_h), jnp.float32, -stdv_fc0, stdv_fc0)
    fc0_b = jax.random.uniform(ks[3], (1, input_dim), jnp.float32, -stdv_fc0, stdv_fc0)

    stdv_fc1 = 1.0 / math.sqrt(input_dim)
    fc1_w = jax.random.uniform(ks[4], (output_dim, input_dim), jnp.float32, -stdv_fc1, stdv_fc1)
    fc1_b = jax.random.uniform(ks[5], (1, output_dim), jnp.float32, -stdv_fc1, stdv_fc1)

    return {
        "W": W,
        "H": H,
        "fc0_wT": fc0_w.T,   # (d_h, input_dim) so kernel does agg @ fc0_wT
        "fc0_b": fc0_b,
        "fc1_wT": fc1_w.T,   # (input_dim, output_dim)
        "fc1_b": fc1_b,
    }


def reference_forward(x, im_inds, params):
    """Plain-JAX f32 reference matching the PyTorch forward exactly."""
    rel1_ = jax.nn.sigmoid((x @ params["W"]) @ x.T)
    rel1_exp = jnp.exp(rel1_)
    mask = (im_inds[:, None] == im_inds[None, :]).astype(rel1_exp.dtype)
    rel1_exp = rel1_exp * mask
    rel1 = rel1_exp / (jnp.sum(rel1_exp, -1) + 1e-8)[:, None]
    fc0 = (rel1 @ (x @ params["H"])) @ params["fc0_wT"] + params["fc0_b"]
    output1 = x + fc0
    output2 = output1 @ params["fc1_wT"] + params["fc1_b"]
    return output1, output2


def reference_forward_matched(x, im_inds, params):
    """Reference applying the same bf16-operand / f32-accumulation casts as the kernel."""
    bf = lambda a: a.astype(jnp.bfloat16)
    mm = lambda a, b: jnp.dot(bf(a), bf(b), preferred_element_type=jnp.float32)
    xw = mm(x, params["W"])
    logits = jax.lax.dot_general(bf(xw), bf(x), (((1,), (1,)), ((), ())),
                                 preferred_element_type=jnp.float32)
    rel1_ = jax.nn.sigmoid(logits)
    rel1_exp = jnp.exp(rel1_) * (im_inds[:, None] == im_inds[None, :]).astype(jnp.float32)
    rel1 = rel1_exp / (jnp.sum(rel1_exp, -1, keepdims=True) + 1e-8)
    xh = bf(mm(x, params["H"]))
    agg = jnp.dot(bf(rel1), xh, preferred_element_type=jnp.float32)
    fc0 = mm(agg, params["fc0_wT"]) + params["fc0_b"]
    out1 = bf(x).astype(jnp.float32) + fc0
    out2 = mm(out1, params["fc1_wT"]) + params["fc1_b"]
    return out1, out2


# ----------------------------- demo ------------------------------------------

if __name__ == "__main__":
    num_obj = 8
    input_dim = 32
    output_dim = 16
    hr = 2

    key = jax.random.PRNGKey(0)
    k_x, k_p = jax.random.split(key)

    x = jax.random.normal(k_x, (num_obj, input_dim), jnp.float32)
    # objects belong to 3 images: [0,0,0,1,1,1,2,2]
    im_inds = jnp.array([0, 0, 0, 1, 1, 1, 2, 2], dtype=jnp.int32)

    params = init_params(k_p, input_dim, output_dim, hr=hr)

    out1, out2 = relational_embedding(x, im_inds, params)
    out1, out2 = jax.block_until_ready(out1), jax.block_until_ready(out2)

    assert out1.shape == (num_obj, input_dim) and out2.shape == (num_obj, output_dim)

    # Tight check vs a reference using the same bf16 matmul casts.
    m1, m2 = reference_forward_matched(x, im_inds, params)
    assert jnp.allclose(out1, m1, atol=3e-2, rtol=3e-2)
    assert jnp.allclose(out2, m2, atol=3e-2, rtol=3e-2)

    # Semantic sanity check vs the exact f32 module math (bf16-level tolerance).
    r1, r2 = reference_forward(x, im_inds, params)
    assert jnp.allclose(out1, r1, atol=1.5e-1, rtol=1e-1)
    assert jnp.allclose(out2, r2, atol=1.5e-1, rtol=1e-1)

    print("KERNEL_OK")
</pallas_src>

<mosaic_0001>
module attributes {stable_mosaic.version = 11 : i64} {
  func.func @rel_embed_kernel(%arg0: i32, %arg1: memref<8x128xbf16, #tpu.memory_space<vmem>>, %arg2: memref<8x128xbf16, #tpu.memory_space<vmem>>, %arg3: memref<8x128xbf16, #tpu.memory_space<vmem>>, %arg4: memref<8x1xi32, #tpu.memory_space<vmem>>, %arg5: memref<1x8xi32, #tpu.memory_space<vmem>>, %arg6: memref<128x128xbf16, #tpu.memory_space<vmem>>, %arg7: memref<128x128xbf16, #tpu.memory_space<vmem>>, %arg8: memref<1x128xf32, #tpu.memory_space<vmem>>, %arg9: memref<128x128xbf16, #tpu.memory_space<vmem>>, %arg10: memref<1x128xf32, #tpu.memory_space<vmem>>, %arg11: memref<8x128xf32, #tpu.memory_space<vmem>>, %arg12: memref<8x128xf32, #tpu.memory_space<vmem>>) attributes {dimension_semantics = [#tpu.dimension_semantics<parallel>], iteration_bounds = array<i64: 1>, scalar_prefetch = 0 : i64, scratch_operands = 0 : i64, tpu.core_type = #tpu.core_type<tc>, window_params = [{transform_indices = @transform_0, window_bounds = array<i64: 8, 128>}, {pipeline_mode = #tpu.pipeline_mode<synchronous>, transform_indices = @transform_1, window_bounds = array<i64: 8, 128>}, {pipeline_mode = #tpu.pipeline_mode<synchronous>, transform_indices = @transform_2, window_bounds = array<i64: 8, 128>}, {transform_indices = @transform_3, window_bounds = array<i64: 8, 1>}, {pipeline_mode = #tpu.pipeline_mode<synchronous>, transform_indices = @transform_4, window_bounds = array<i64: 1, 8>}, {pipeline_mode = #tpu.pipeline_mode<synchronous>, transform_indices = @transform_5, window_bounds = array<i64: 128, 128>}, {pipeline_mode = #tpu.pipeline_mode<synchronous>, transform_indices = @transform_6, window_bounds = array<i64: 128, 128>}, {pipeline_mode = #tpu.pipeline_mode<synchronous>, transform_indices = @transform_7, window_bounds = array<i64: 1, 128>}, {pipeline_mode = #tpu.pipeline_mode<synchronous>, transform_indices = @transform_8, window_bounds = array<i64: 128, 128>}, {pipeline_mode = #tpu.pipeline_mode<synchronous>, transform_indices = @transform_9, window_bounds = array<i64: 1, 128>}, {transform_indices = @transform_10, window_bounds = array<i64: 8, 128>}, {transform_indices = @transform_11, window_bounds = array<i64: 8, 128>}]} {
    %c0 = arith.constant 0 : index
    %c0_0 = arith.constant 0 : index
    %0 = vector.load %arg1[%c0, %c0_0] : memref<8x128xbf16, #tpu.memory_space<vmem>>, vector<8x128xbf16>
    %c0_1 = arith.constant 0 : index
    %c0_2 = arith.constant 0 : index
    %1 = vector.load %arg6[%c0_1, %c0_2] : memref<128x128xbf16, #tpu.memory_space<vmem>>, vector<128x128xbf16>
    %cst = arith.constant dense<0.000000e+00> : vector<8x128xf32>
    %2 = tpu.matmul %0, %1, %cst {dimension_numbers = #tpu.dot_dimension_numbers<[1], [0], [0], [1], [0, 0, 1, 1], [], []>} : vector<8x128xbf16>, vector<128x128xbf16>, vector<8x128xf32> -> vector<8x128xf32>
    %3 = arith.truncf %2 : vector<8x128xf32> to vector<8x128xbf16>
    %c0_3 = arith.constant 0 : index
    %c0_4 = arith.constant 0 : index
    %4 = vector.load %arg2[%c0_3, %c0_4] : memref<8x128xbf16, #tpu.memory_space<vmem>>, vector<8x128xbf16>
    %cst_5 = arith.constant dense<0.000000e+00> : vector<8x8xf32>
    %5 = tpu.matmul %3, %4, %cst_5 {dimension_numbers = #tpu.dot_dimension_numbers<[1], [1], [0], [0], [0, 0, 1, 0], [], []>} : vector<8x128xbf16>, vector<8x128xbf16>, vector<8x8xf32> -> vector<8x8xf32>
    %6 = arith.negf %5 : vector<8x8xf32>
    %7 = math.exp %6 : vector<8x8xf32>
    %cst_6 = arith.constant 1.000000e+00 : f32
    %8 = vector.broadcast %cst_6 : f32 to vector<8x8xf32>
    %9 = arith.addf %8, %7 : vector<8x8xf32>
    %10 = arith.divf %8, %9 : vector<8x8xf32>
    %11 = math.exp %10 : vector<8x8xf32>
    %c0_7 = arith.constant 0 : index
    %c0_8 = arith.constant 0 : index
    %12 = vector.load %arg4[%c0_7, %c0_8] : memref<8x1xi32, #tpu.memory_space<vmem>>, vector<8x1xi32>
    %c0_9 = arith.constant 0 : index
    %c0_10 = arith.constant 0 : index
    %13 = vector.load %arg5[%c0_9, %c0_10] : memref<1x8xi32, #tpu.memory_space<vmem>>, vector<1x8xi32>
    %14 = vector.broadcast %12 : vector<8x1xi32> to vector<8x8xi32>
    %15 = vector.broadcast %13 : vector<1x8xi32> to vector<8x8xi32>
    %16 = arith.cmpi eq, %14, %15 : vector<8x8xi32>
    %17 = arith.extui %16 : vector<8x8xi1> to vector<8x8xi32>
    %18 = arith.sitofp %17 : vector<8x8xi32> to vector<8x8xf32>
    %19 = arith.mulf %11, %18 : vector<8x8xf32>
    %cst_11 = arith.constant dense<0.000000e+00> : vector<8xf32>
    %20 = vector.multi_reduction <add>, %19, %cst_11 [1] : vector<8x8xf32> to vector<8xf32>
    %21 = vector.shape_cast %20 : vector<8xf32> to vector<8x1xf32>
    %cst_12 = arith.constant 9.99999993E-9 : f32
    %22 = vector.broadcast %cst_12 : f32 to vector<8x1xf32>
    %23 = arith.addf %21, %22 : vector<8x1xf32>
    %24 = tpu.reciprocal %23 {approx = true} : vector<8x1xf32> -> vector<8x1xf32>
    %25 = vector.broadcast %24 : vector<8x1xf32> to vector<8x8xf32>
    %26 = arith.mulf %19, %25 : vector<8x8xf32>
    %27 = arith.truncf %26 : vector<8x8xf32> to vector<8x8xbf16>
    %c0_13 = arith.constant 0 : index
    %c0_14 = arith.constant 0 : index
    %28 = vector.load %arg3[%c0_13, %c0_14] : memref<8x128xbf16, #tpu.memory_space<vmem>>, vector<8x128xbf16>
    %cst_15 = arith.constant dense<0.000000e+00> : vector<8x128xf32>
    %29 = tpu.matmul %27, %28, %cst_15 {dimension_numbers = #tpu.dot_dimension_numbers<[1], [0], [0], [1], [0, 0, 1, 1], [], []>} : vector<8x8xbf16>, vector<8x128xbf16>, vector<8x128xf32> -> vector<8x128xf32>
    %30 = arith.truncf %29 : vector<8x128xf32> to vector<8x128xbf16>
    %c0_16 = arith.constant 0 : index
    %c0_17 = arith.constant 0 : index
    %31 = vector.load %arg7[%c0_16, %c0_17] : memref<128x128xbf16, #tpu.memory_space<vmem>>, vector<128x128xbf16>
    %cst_18 = arith.constant dense<0.000000e+00> : vector<8x128xf32>
    %32 = tpu.matmul %30, %31, %cst_18 {dimension_numbers = #tpu.dot_dimension_numbers<[1], [0], [0], [1], [0, 0, 1, 1], [], []>} : vector<8x128xbf16>, vector<128x128xbf16>, vector<8x128xf32> -> vector<8x128xf32>
    %c0_19 = arith.constant 0 : index
    %c0_20 = arith.constant 0 : index
    %33 = vector.load %arg8[%c0_19, %c0_20] : memref<1x128xf32, #tpu.memory_space<vmem>>, vector<1x128xf32>
    %34 = vector.broadcast %33 : vector<1x128xf32> to vector<8x128xf32>
    %35 = arith.addf %32, %34 : vector<8x128xf32>
    %36 = arith.extf %0 : vector<8x128xbf16> to vector<8x128xf32>
    %37 = arith.addf %36, %35 : vector<8x128xf32>
    %c0_21 = arith.constant 0 : index
    %c0_22 = arith.constant 0 : index
    %38 = vector.load %arg11[%c0_21, %c0_22] : memref<8x128xf32, #tpu.memory_space<vmem>>, vector<8x128xf32>
    tpu.vector_store %arg11[%c0_21, %c0_22], %37 {strides = array<i32>} : memref<8x128xf32, #tpu.memory_space<vmem>>, vector<8x128xf32>,
    %39 = arith.truncf %37 : vector<8x128xf32> to vector<8x128xbf16>
    %c0_23 = arith.constant 0 : index
    %c0_24 = arith.constant 0 : index
    %40 = vector.load %arg9[%c0_23, %c0_24] : memref<128x128xbf16, #tpu.memory_space<vmem>>, vector<128x128xbf16>
    %cst_25 = arith.constant dense<0.000000e+00> : vector<8x128xf32>
    %41 = tpu.matmul %39, %40, %cst_25 {dimension_numbers = #tpu.dot_dimension_numbers<[1], [0], [0], [1], [0, 0, 1, 1], [], []>} : vector<8x128xbf16>, vector<128x128xbf16>, vector<8x128xf32> -> vector<8x128xf32>
    %c0_26 = arith.constant 0 : index
    %c0_27 = arith.constant 0 : index
    %42 = vector.load %arg10[%c0_26, %c0_27] : memref<1x128xf32, #tpu.memory_space<vmem>>, vector<1x128xf32>
    %43 = vector.broadcast %42 : vector<1x128xf32> to vector<8x128xf32>
    %44 = arith.addf %41, %43 : vector<8x128xf32>
    %c0_28 = arith.constant 0 : index
    %c0_29 = arith.constant 0 : index
    %45 = vector.load %arg12[%c0_28, %c0_29] : memref<8x128xf32, #tpu.memory_space<vmem>>, vector<8x128xf32>
    tpu.vector_store %arg12[%c0_28, %c0_29], %44 {strides = array<i32>} : memref<8x128xf32, #tpu.memory_space<vmem>>, vector<8x128xf32>,
    return
  }
  func.func @transform_0(%arg0: i32) -> (i32, i32) {
    %c0_i32 = arith.constant 0 : i32
    %c0_i32_0 = arith.constant 0 : i32
    return %arg0, %c0_i32 : i32, i32
  }
  func.func @transform_1(%arg0: i32) -> (i32, i32) {
    %c0_i32 = arith.constant 0 : i32
    %c0_i32_0 = arith.constant 0 : i32
    %c0_i32_1 = arith.constant 0 : i32
    return %c0_i32, %c0_i32_0 : i32, i32
  }
  func.func @transform_2(%arg0: i32) -> (i32, i32) {
    %c0_i32 = arith.constant 0 : i32
    %c0_i32_0 = arith.constant 0 : i32
    %c0_i32_1 = arith.constant 0 : i32
    return %c0_i32, %c0_i32_0 : i32, i32
  }
  func.func @transform_3(%arg0: i32) -> (i32, i32) {
    %c0_i32 = arith.constant 0 : i32
    %c0_i32_0 = arith.constant 0 : i32
    return %arg0, %c0_i32 : i32, i32
  }
  func.func @transform_4(%arg0: i32) -> (i32, i32) {
    %c0_i32 = arith.constant 0 : i32
    %c0_i32_0 = arith.constant 0 : i32
    %c0_i32_1 = arith.constant 0 : i32
    return %c0_i32, %c0_i32_0 : i32, i32
  }
  func.func @transform_5(%arg0: i32) -> (i32, i32) {
    %c0_i32 = arith.constant 0 : i32
    %c0_i32_0 = arith.constant 0 : i32
    %c0_i32_1 = arith.constant 0 : i32
    return %c0_i32, %c0_i32_0 : i32, i32
  }
  func.func @transform_6(%arg0: i32) -> (i32, i32) {
    %c0_i32 = arith.constant 0 : i32
    %c0_i32_0 = arith.constant 0 : i32
    %c0_i32_1 = arith.constant 0 : i32
    return %c0_i32, %c0_i32_0 : i32, i32
  }
  func.func @transform_7(%arg0: i32) -> (i32, i32) {
    %c0_i32 = arith.constant 0 : i32
    %c0_i32_0 = arith.constant 0 : i32
    %c0_i32_1 = arith.constant 0 : i32
    return %c0_i32, %c0_i32_0 : i32, i32
  }
  func.func @transform_8(%arg0: i32) -> (i32, i32) {
    %c0_i32 = arith.constant 0 : i32
    %c0_i32_0 = arith.constant 0 : i32
    %c0_i32_1 = arith.constant 0 : i32
    return %c0_i32, %c0_i32_0 : i32, i32
  }
  func.func @transform_9(%arg0: i32) -> (i32, i32) {
    %c0_i32 = arith.constant 0 : i32
    %c0_i32_0 = arith.constant 0 : i32
    %c0_i32_1 = arith.constant 0 : i32
    return %c0_i32, %c0_i32_0 : i32, i32
  }
  func.func @transform_10(%arg0: i32) -> (i32, i32) {
    %c0_i32 = arith.constant 0 : i32
    %c0_i32_0 = arith.constant 0 : i32
    return %arg0, %c0_i32 : i32, i32
  }
  func.func @transform_11(%arg0: i32) -> (i32, i32) {
    %c0_i32 = arith.constant 0 : i32
    %c0_i32_0 = arith.constant 0 : i32
    return %arg0, %c0_i32 : i32, i32
  }
}

module attributes {stable_mosaic.version = 11 : i64} {
  func.func @xh_kernel(%arg0: i32, %arg1: memref<8x128xbf16, #tpu.memory_space<vmem>>, %arg2: memref<128x128xbf16, #tpu.memory_space<vmem>>, %arg3: memref<8x128xbf16, #tpu.memory_space<vmem>>) attributes {dimension_semantics = [#tpu.dimension_semantics<parallel>], iteration_bounds = array<i64: 1>, scalar_prefetch = 0 : i64, scratch_operands = 0 : i64, tpu.core_type = #tpu.core_type<tc>, window_params = [{transform_indices = @transform_0, window_bounds = array<i64: 8, 128>}, {pipeline_mode = #tpu.pipeline_mode<synchronous>, transform_indices = @transform_1, window_bounds = array<i64: 128, 128>}, {transform_indices = @transform_2, window_bounds = array<i64: 8, 128>}]} {
    %c0 = arith.constant 0 : index
    %c0_0 = arith.constant 0 : index
    %0 = vector.load %arg1[%c0, %c0_0] : memref<8x128xbf16, #tpu.memory_space<vmem>>, vector<8x128xbf16>
    %c0_1 = arith.constant 0 : index
    %c0_2 = arith.constant 0 : index
    %1 = vector.load %arg2[%c0_1, %c0_2] : memref<128x128xbf16, #tpu.memory_space<vmem>>, vector<128x128xbf16>
    %cst = arith.constant dense<0.000000e+00> : vector<8x128xf32>
    %2 = tpu.matmul %0, %1, %cst {dimension_numbers = #tpu.dot_dimension_numbers<[1], [0], [0], [1], [0, 0, 1, 1], [], []>} : vector<8x128xbf16>, vector<128x128xbf16>, vector<8x128xf32> -> vector<8x128xf32>
    %3 = arith.truncf %2 : vector<8x128xf32> to vector<8x128xbf16>
    %c0_3 = arith.constant 0 : index
    %c0_4 = arith.constant 0 : index
    %4 = vector.load %arg3[%c0_3, %c0_4] : memref<8x128xbf16, #tpu.memory_space<vmem>>, vector<8x128xbf16>
    tpu.vector_store %arg3[%c0_3, %c0_4], %3 {strides = array<i32>} : memref<8x128xbf16, #tpu.memory_space<vmem>>, vector<8x128xbf16>,
    return
  }
  func.func @transform_0(%arg0: i32) -> (i32, i32) {
    %c0_i32 = arith.constant 0 : i32
    %c0_i32_0 = arith.constant 0 : i32
    return %arg0, %c0_i32 : i32, i32
  }
  func.func @transform_1(%arg0: i32) -> (i32, i32) {
    %c0_i32 = arith.constant 0 : i32
    %c0_i32_0 = arith.constant 0 : i32
    %c0_i32_1 = arith.constant 0 : i32
    return %c0_i32, %c0_i32_0 : i32, i32
  }
  func.func @transform_2(%arg0: i32) -> (i32, i32) {
    %c0_i32 = arith.constant 0 : i32
    %c0_i32_0 = arith.constant 0 : i32
    return %arg0, %c0_i32 : i32, i32
  }
}

</mosaic_0001>

<bundles_post_ra>
// kernel: relational_embedding.2
= control target key start
LH: loop header
LB: loop body
LE: loop exit
PB: predicated region body
PF: predicated region fallthrough
CT: control target
= control target key end

     0   :  { %s180_s1 = inlined_call_operand.vmem [shape: bf16[128,128], index: 1, kind: input, shape index: {}]   ;;  %s181_s0 = inlined_call_operand.vmem [shape: bf16[8,128], index: 0, kind: input, shape index: {}]   ;;  %s182_s2 = inlined_call_operand.vmem [shape: bf16[8,128], index: 2, kind: output, shape index: {}]  }
   0x1   :  { %v134_v0 = vld [vmem:[%s180_s1 + $0x38] sm:$0xff]  ;;  %v133_v1 = vld [vmem:[%s180_s1 + $0x30] sm:$0xff]  ;;  %v132_v2 = vld [vmem:[%s180_s1 + $0x28] sm:$0xff] }
   0x2   :  { %76 = vmatpush.bf16.msra.mxu0 %v134_v0  ;;  %v131_v3 = vld [vmem:[%s180_s1 + $0x20] sm:$0xff]  ;;  %v130_v4 = vld [vmem:[%s180_s1 + $0x18] sm:$0xff]  ;;  %v129_v5 = vld [vmem:[%s180_s1 + $0x10] sm:$0xff] }
   0x3   :  { %v128_v6 = vld [vmem:[%s180_s1 + $0x8] sm:$0xff]  ;;  %v127_v7 = vld [vmem:[%s180_s1] sm:$0xff] }
   0x4   :  { %v11_v8 = vld [vmem:[%s181_s0] sm:$0xf] }
   0x6   :  { %77 = vmatpush.bf16.msra.mxu0 %v133_v1 }
   0xa   :  { %78 = vmatpush.bf16.msra.mxu0 %v132_v2 }
   0xe   :  { %79 = vmatpush.bf16.msra.mxu0 %v131_v3 }
  0x12   :  { %80 = vmatpush.bf16.msra.mxu0 %v130_v4 }
  0x16   :  { %81 = vmatpush.bf16.msra.mxu0 %v129_v5 }
  0x1a   :  { %82 = vmatpush.bf16.msra.mxu0 %v128_v6 }
  0x1e   :  { %83 = vmatpush.bf16.msra.mxu0 %v127_v7 }
  0x21   :  { %84 = vmatmul.bf16.vlgmr.msra.gmra.mxu0 %v11_v8 }
  0x9e   :  { %v85_v9 = vpop.f32.mrf.mxu0 }
  0x9f   :  { %v89_v10 = vpack.c.bf16 %v85_v9, %v85_v9 }
  0xa1   :  { %90 = vst [vmem:[%s182_s2] sm:$0xf] %v89_v10 }
  0xa6   :  { %v87_v11 = vpop.f32.mrf.mxu0 }

// kernel: relational_embedding.3
= control target key start
LH: loop header
LB: loop body
LE: loop exit
PB: predicated region body
PF: predicated region fallthrough
CT: control target
= control target key end

     0   :  { %17 = vsyncpa [#allocation3], 0  ;;  %s753_s0 = inlined_call_operand.vmem [shape: bf16[8,128], index: 0, kind: input, shape index: {}, may-alias: {0,1}]   ;;  %s754_s1 = inlined_call_operand.vmem [shape: bf16[8,128], index: 1, kind: input, shape index: {}, may-alias: {0,1}]   ;;  %s755_s2 = inlined_call_operand.vmem [shape: bf16[8,128], index: 2, kind: input, shape index: {}]   ;;  %s756_s3 = inlined_call_operand.vmem [shape: s32[8,1], index: 3, kind: input, shape index: {}]   ;;  %s757_s4 = inlined_call_operand.vmem [shape: s32[1,8], index: 4, kind: input, shape index: {}]   ;;  %s758_s5 = inlined_call_operand.vmem [shape: bf16[128,128], index: 5, kind: input, shape index: {}]   ;;  %s759_s6 = inlined_call_operand.vmem [shape: bf16[128,128], index: 6, kind: input, shape index: {}]   ;;  %s760_s7 = inlined_call_operand.vmem [shape: f32[1,128], index: 7, kind: input, shape index: {}]   ;;  %s761_s8 = inlined_call_operand.vmem [shape: bf16[128,128], index: 8, kind: input, shape index: {}]   ;;  %s762_s9 = inlined_call_operand.vmem [shape: f32[1,128], index: 9, kind: input, shape index: {}]   ;;  %s763_s10 = inlined_call_operand.hbm [shape: f32[8,128], index: 10, kind: output, shape index: {0}]   ;;  %s764_s11 = inlined_call_operand.hbm [shape: f32[8,128], index: 11, kind: output, shape index: {1}]  }
   0x1   :  { %v499_v0 = vld [vmem:[%s758_s5 + $0x38] sm:$0xff]  ;;  %v498_v1 = vld [vmem:[%s758_s5 + $0x30] sm:$0xff]  ;;  %v119_v2 = vld [vmem:[%s754_s1] sm:$0xf] }
   0x2   :  { %105 = vmatpush.bf16.msra.mxu0 %v499_v0  ;;  %127 = vmatpush.bf16.xpose.msra.mxu1 %v119_v2 }
   0x3   :  { %18 = vsyncpa [#allocation5], 0  ;;  %v497_v3 = vld [vmem:[%s758_s5 + $0x28] sm:$0xff]  ;;  %v496_v4 = vld [vmem:[%s758_s5 + $0x20] sm:$0xff]  ;;  %v584_v11 = vmov 0   ;;  %vm176_vm0 = vcmask 1043456  }
   0x4   :  { %v495_v5 = vld [vmem:[%s758_s5 + $0x18] sm:$0xff]  ;;  %v494_v6 = vld [vmem:[%s758_s5 + $0x10] sm:$0xff]  ;;  %v493_v7 = vld [vmem:[%s758_s5 + $0x8] sm:$0xff]  ;;  %520 = vset.pattern.permute.xlu0 %v584_v11  ;;  %v585_v35 = vmov 0.0   ;;  %vm164_vm6 = vcmask 64512   ;;  %s586_s26 = smov [#allocation2]  }
   0x5   :  { %v492_v8 = vld [vmem:[%s758_s5] sm:$0xff]  ;;  %v507_v40 = vld [vmem:[%s759_s6 + $0x38] sm:$0xff]  ;;  %v506_v41 = vld [vmem:[%s759_s6 + $0x30] sm:$0xff]  ;;  %s366_s27 = sshll.u32 %s586_s26, 4  ;;  %s587_s30 = smov [#allocation4]   ;;  %s367_s27 = int_to_ptr.vmem [resolvable:$true] %s366_s27 }
   0x6   :  { %106 = vmatpush.bf16.msra.mxu0 %v498_v1  ;;  %v678_v9 = vld [vmem:[%s753_s0] sm:$0xf]  ;;  %262 = vmatpush.bf16.msra.mxu3 %v507_v40  ;;  %v505_v42 = vld [vmem:[%s759_s6 + $0x28] sm:$0xff]  ;;  %v503_v44 = vld [vmem:[%s759_s6 + $0x18] sm:$0xff]  ;;  %s377_s12 = sshll.u32 %s587_s30, 4  ;;  %s379_s15 = sshll.u32 %s764_s11, 4  ;;  %s378_s12 = int_to_ptr.vmem [resolvable:$true] %s377_s12  ;;  %s380_s15 = int_to_ptr.hbm [resolvable:$true] %s379_s15 }
   0x7   :  { %v154_v10 = vld [vmem:[%s756_s3] sm:$0xff]  ;;  %v502_v46 = vld [vmem:[%s759_s6 + $0x10] sm:$0xff]  ;;  %v501_v48 = vld [vmem:[%s759_s6 + $0x8] sm:$0xff]  ;;  %v275_v1 = vunpack.c.l.bf16 %v678_v9 }
   0x8   :  { %157 = vperm.xlu0 %520, %v154_v10   ;;  %v172_v19 = vld [vmem:[%s755_s2] sm:$0xf]  ;;  %v515_v53 = vld [vmem:[%s761_s8 + $0x38] sm:$0xff]  ;;  %v514_v54 = vld [vmem:[%s761_s8 + $0x30] sm:$0xff] }
   0x9   :  { %v178_v21 = vsel %vm176_vm0, %v172_v19, 0  ;;  %v521_v31 = vld [vmem:[%s757_s4] ss:$0 sm:$0xff]  ;;  %347 = vmatpush.bf16.msra.mxu2 %v515_v53  ;;  %v513_v55 = vld [vmem:[%s761_s8 + $0x28] sm:$0xff]  ;;  %v511_v57 = vld [vmem:[%s761_s8 + $0x18] sm:$0xff] }
   0xa   :  { %107 = vmatpush.bf16.msra.mxu0 %v497_v3  ;;  %187 = vmatpush.bf16.msrb.mxu1 %v178_v21  ;;  %v504_v43 = vld [vmem:[%s759_s6 + $0x20] sm:$0xff]  ;;  %v510_v58 = vld [vmem:[%s761_s8 + $0x10] sm:$0xff]  ;;  %v509_v62 = vld [vmem:[%s761_s8 + $0x8] sm:$0xff] }
   0xb   :  { %263 = vmatpush.bf16.msra.mxu3 %v506_v41  ;;  %v500_v52 = vld [vmem:[%s759_s6] sm:$0xff] }
   0xc   :  { %v512_v56 = vld [vmem:[%s761_s8 + $0x20] sm:$0xff] }
   0xd   :  { %348 = vmatpush.bf16.msra.mxu2 %v514_v54  ;;  %v508_v63 = vld [vmem:[%s761_s8] sm:$0xff]  ;;  %s368_s8 = sshll.u32 %s763_s10, 4  ;;  %s369_s8 = int_to_ptr.hbm [resolvable:$true] %s368_s8 }
   0xe   :  { %108 = vmatpush.bf16.msra.mxu0 %v496_v4  ;;  %v522_v0 = vld [vmem:[%s760_s7] ss:$0 sm:$0xff] }
   0xf   :  { %264 = vmatpush.bf16.msra.mxu3 %v505_v42 }
  0x11   :  { %349 = vmatpush.bf16.msra.mxu2 %v513_v55 }
  0x12   :  { %109 = vmatpush.bf16.msra.mxu0 %v495_v5 }
  0x13   :  { %265 = vmatpush.bf16.msra.mxu3 %v504_v43 }
  0x15   :  { %350 = vmatpush.bf16.msra.mxu2 %v512_v56 }
  0x16   :  { %110 = vmatpush.bf16.msra.mxu0 %v494_v6 }
  0x17   :  { %266 = vmatpush.bf16.msra.mxu3 %v503_v44 }
  0x19   :  { %351 = vmatpush.bf16.msra.mxu2 %v511_v57 }
  0x1a   :  { %111 = vmatpush.bf16.msra.mxu0 %v493_v7  ;;  %v523_v7 = vld [vmem:[%s762_s9] ss:$0 sm:$0xff] }
  0x1b   :  { %267 = vmatpush.bf16.msra.mxu3 %v502_v46 }
  0x1d   :  { %352 = vmatpush.bf16.msra.mxu2 %v510_v58 }
  0x1e   :  { %112 = vmatpush.bf16.msra.mxu0 %v492_v8 }
  0x1f   :  { %268 = vmatpush.bf16.msra.mxu3 %v501_v48 }
  0x21   :  { %113 = vmatmul.bf16.vlgmr.msra.gmra.mxu0 %v678_v9  ;;  %353 = vmatpush.bf16.msra.mxu2 %v509_v62 }
  0x23   :  { %269 = vmatpush.bf16.msra.mxu3 %v500_v52 }
  0x25   :  { %354 = vmatpush.bf16.msra.mxu2 %v508_v63 }
  0x7a   :  { %v158_v33 = vpop.permute.xlu0 %157 }
  0x7b   :  { %vm160_vm5 = vcmp.eq.s32.totalorder %v158_v33, %v521_v31 }
  0x7c   :  { %v426_v36 = vsel %vm160_vm5, 1.0, %v585_v35 }
  0x9e   :  { %v114_v12 = vpop.f32.mrf.mxu0 }
  0x9f   :  { %v118_v13 = vpack.c.bf16 %v114_v12, %v114_v12 }
  0xa1   :  { %128 = vmatmul.bf16.vlgmr.msra.gmra.mxu1 %v118_v13 }
  0xa6   :  { %v116_v14 = vpop.f32.mrf.mxu0 }
 0x11e   :  { %v129_v15 = vpop.f32.mrf.mxu1 }
 0x11f   :  { %v425_v16 = vmul.f32 -1.442695, %v129_v15 }
 0x121   :  { %524 = vpow2.f32 %v425_v16 }
 0x126   :  { %v131_v17 = vpop.f32.mrf.mxu1 }
 0x127   :  { %v525_v18 = vpop.eup %524 }
 0x128   :  { %v136_v20 = vadd.f32 1.0, %v525_v18 }
 0x12a   :  { %526 = vrcp.f32 %v136_v20  ;;  %v148_v25 = vand.u32 2147483648, %v136_v20  ;;  %v146_v27 = vand.u32 2147483647, %v136_v20  ;;  %vm142_vm2 = vweird.f32 %v136_v20 }
 0x12c   :  { %v149_v29 = vor.u32 1.1754944e-38, %v148_v25  ;;  %vm147_vm4 = vcmp.eq.f32.partialorder %v146_v27, 8.507059e+37 }
 0x130   :  { %v527_v22 = vpop.eup %526 }
 0x131   :  { %v138_v23 = vmul.f32 %v527_v22, %v136_v20  ;;  %vm143_vm1 = vweird.f32 %v527_v22 }
 0x132   :  { %vm144_vm3 = vmor %vm142_vm2, %vm143_vm1 }
 0x133   :  { %v139_v24 = vsub.f32 1.0, %v138_v23 }
 0x135   :  { %v140_v26 = vmul.f32 %v527_v22, %v139_v24 }
 0x137   :  { %v141_v28 = vadd.f32 %v527_v22, %v140_v26 }
 0x139   :  { %v145_v30 = vsel %vm144_vm3, %v527_v22, %v141_v28 }
 0x13a   :  { %v150_v32 = vsel %vm147_vm4, %v149_v29, %v145_v30 }
 0x13b   :  { %v152_v34 = vmul.f32 1.442695, %v150_v32 }
 0x13d   :  { %528 = vpow2.f32 %v152_v34 }
 0x143   :  { %v529_v37 = vpop.eup %528 }
 0x144   :  { %v163_v38 = vmul.f32 %v529_v37, %v426_v36 }
 0x146   :  { %v165_v39 = vsel %vm164_vm6, %v163_v38, 0.0 }
 0x147   :  { %166 = vadd.xlane.f32.xlu0 %v165_v39 }
 0x1ba   :  { %v167_v45 = vpop.xlane.xlu0 %166 }
 0x1bb   :  { %v168_v47 = vadd.f32 1e-08, %v167_v45 }
 0x1bd   :  { %530 = vrcp.f32 %v168_v47 }
 0x1c3   :  { %v531_v49 = vpop.eup %530 }
 0x1c4   :  { %v170_v50 = vmul.f32 %v531_v49, %v163_v38 }
 0x1c6   :  { %v171_v51 = vpack.c.bf16 %v170_v50, %v170_v50 }
 0x1c8   :  { %427 = vmatmul.msk.bf16.vlgmr.msrb.gmra.mxu1 %vm164_vm6, %v171_v51 }
 0x245   :  { %v189_v59 = vpop.f32.mrf.mxu1 }
 0x246   :  { %v193_v60 = vpack.c.bf16 %v189_v59, %v189_v59 }
 0x248   :  { %270 = vmatmul.bf16.vlgmr.msra.gmra.mxu3 %v193_v60 }
 0x24d   :  { %v191_v61 = vpop.f32.mrf.mxu1 }
 0x2cb   :  { %v271_v2 = vpop.f32.mrf.mxu3 }
 0x2cc   :  { %v272_v3 = vadd.f32 %v522_v0, %v271_v2 }
 0x2ce   :  { %v276_v4 = vadd.f32 %v275_v1, %v272_v3 }
 0x2d0   :  { %277 = vst [vmem:[#allocation2] sm:$0xff] %v276_v4  ;;  %v278_v5 = vpack.c.bf16 %v276_v4, %v276_v4 }
 0x2d1   :  { %371 = dma.vmem_to_hbm [thread:$0]  %s367_s27, 128, %s369_s8, [#allocation3]  }
 0x2d2   :  { %355 = vmatmul.bf16.vlgmr.msra.gmra.mxu2 %v278_v5 }
 0x2d3   :  { %v273_v6 = vpop.f32.mrf.mxu3 }
 0x355   :  { %v356_v8 = vpop.f32.mrf.mxu2 }
 0x356   :  { %v357_v9 = vadd.f32 %v523_v7, %v356_v8 }
 0x358   :  { %360 = vst [vmem:[#allocation4] sm:$0xff] %v357_v9 }
 0x359   :  { %382 = dma.vmem_to_hbm [thread:$0]  %s378_s12, 128, %s380_s15, [#allocation5]  }
 0x35d   :  { %v358_v10 = vpop.f32.mrf.mxu2 }
 0x35e   :  { %580 = dma.done.wait [#allocation3], 128  }
 0x35f   :  { %581 = vsyncadd [#allocation3], 4294967168 }
 0x360   :  { %582 = dma.done.wait [#allocation5], 128  }
 0x361   :  { %583 = vsyncadd [#allocation5], 4294967168 }
 0x362   :  { %391 = vsyncpa [#allocation3], 1 }
 0x363   :  { %392 = vsyncpa [#allocation5], 1 }

</bundles_post_ra>
